<compile_context>
chip_gen: v5e
topology: v5e:2x2
jax: 0.10.0
libtpu: 0.0.40
codegen_flags: <defaults>
</compile_context>

<pallas_src>
import jax
import jax.numpy as jnp
from jax import lax
from jax.experimental import pallas as pl
from jax.experimental.pallas import tpu as pltpu

H1, H2 = 64, 32  # hidden sizes of the DipModel MLP


def _mlp_kernel(x_ref, w1_ref, b1_ref, w2_ref, b2_ref, w3_ref, b3_ref, o_ref):
    # Fused hot path: everything stays in VMEM / vregs for one batch tile.
    x = x_ref[...]                                                   # (tb, D)
    h1 = jnp.dot(x, w1_ref[...], preferred_element_type=jnp.float32) + b1_ref[...]
    h1 = jnp.maximum(h1, 0.0)                                        # ReLU
    h2 = jnp.dot(h1, w2_ref[...], preferred_element_type=jnp.float32) + b2_ref[...]
    h2 = jnp.maximum(h2, 0.0)                                        # ReLU
    # Final layer has out_features == 1: contract the (1, 32) weight row
    # against h2's feature axis so the result is already (1, tb) with the
    # batch along lanes (lane-dense output block, no (tb,1) masked store).
    z = lax.dot_general(
        w3_ref[...], h2,
        dimension_numbers=(((1,), (1,)), ((), ())),
        preferred_element_type=jnp.float32)                          # (1, tb)
    o_ref[...] = jax.nn.sigmoid(z + b3_ref[...])                     # Sigmoid


def _round_up(n, m):
    return ((n + m - 1) // m) * m


def dip_model_forward(x, params, *, tile_b=512):
    """x: (B, input_size) float32 -> (B, 1) float32."""
    w1, b1, w2, b2, w3, b3 = params
    B, D = x.shape

    # Batch tile: a single (ragged) tile for small B, otherwise a multiple of
    # 128 so the lane-dense output block satisfies the (8, 128) tiling rule.
    # VMEM note: the double-buffered x tile costs 2 * tb * D * 4 bytes; with
    # the default tb=512 this is tiny for typical input_size, but shrink
    # tile_b for very large D (v5e scoped default 16 MiB, v7x VMEM 64 MiB).
    if B <= tile_b:
        tb = _round_up(max(B, 1), 8)
    else:
        tb = max(128, (tile_b // 128) * 128)
    num_tiles = (B + tb - 1) // tb

    def weight_spec(shape):
        # Grid-invariant operand: single-buffer it (no point double-buffering).
        return pl.BlockSpec(shape, lambda i: (0, 0),
                            pipeline_mode=pl.Buffered(1))

    out = pl.pallas_call(
        _mlp_kernel,
        out_shape=jax.ShapeDtypeStruct((1, num_tiles * tb), jnp.float32),
        grid_spec=pltpu.PrefetchScalarGridSpec(
            num_scalar_prefetch=0,
            grid=(num_tiles,),
            in_specs=[
                pl.BlockSpec((tb, D), lambda i: (i, 0)),   # x tile (streamed)
                weight_spec((D, H1)),                      # W1
                weight_spec((1, H1)),                      # b1
                weight_spec((H1, H2)),                     # W2
                weight_spec((1, H2)),                      # b2
                weight_spec((1, H2)),                      # W3 (row vector)
                weight_spec((1, 1)),                       # b3
            ],
            out_specs=pl.BlockSpec((1, tb), lambda i: (0, i)),  # lane-dense
        ),
        compiler_params=pltpu.CompilerParams(
            dimension_semantics=("parallel",)),
    )(x, w1, b1, w2, b2, w3, b3)

    # Output was written batch-along-lanes; drop the ragged-tile tail rows.
    return out.reshape(-1)[:B].reshape(B, 1)


def init_params(key, input_size):
    """PyTorch-default-style init; W1/W2 stored (in, out), W3 as a (1, 32) row."""
    ks = jax.random.split(key, 6)

    def unif(k, shape, fan_in):
        bound = fan_in ** -0.5
        return jax.random.uniform(k, shape, jnp.float32, -bound, bound)

    w1 = unif(ks[0], (input_size, H1), input_size)
    b1 = unif(ks[1], (1, H1), input_size)
    w2 = unif(ks[2], (H1, H2), H1)
    b2 = unif(ks[3], (1, H2), H1)
    w3 = unif(ks[4], (1, H2), H2)      # (out=1, in=32) row vector
    b3 = unif(ks[5], (1, 1), H2)
    return (w1, b1, w2, b2, w3, b3)


def reference_forward(x, params):
    w1, b1, w2, b2, w3, b3 = params
    h1 = jnp.maximum(x @ w1 + b1, 0.0)
    h2 = jnp.maximum(h1 @ w2 + b2, 0.0)
    return jax.nn.sigmoid(h2 @ w3.T + b3)


if __name__ == "__main__":
    key = jax.random.PRNGKey(0)
    k_x, k_x2, k_p = jax.random.split(key, 3)

    input_size = 32
    params = init_params(k_p, input_size)

    # Small primary test (single ragged tile path).
    batch = 2
    x = jax.random.normal(k_x, (batch, input_size), jnp.float32)
    out = jax.block_until_ready(dip_model_forward(x, params))
    ref = reference_forward(x, params)
    assert out.shape == (batch, 1), out.shape
    assert jnp.allclose(out, ref, atol=1e-5, rtol=1e-5), "mismatch vs reference"

    # Multi-tile path with a ragged last block and lane-dense output blocks.
    batch2 = 300
    x2 = jax.random.normal(k_x2, (batch2, input_size), jnp.float32)
    out2 = jax.block_until_ready(dip_model_forward(x2, params, tile_b=128))
    ref2 = reference_forward(x2, params)
    assert out2.shape == (batch2, 1), out2.shape
    assert jnp.allclose(out2, ref2, atol=1e-5, rtol=1e-5), "mismatch vs reference (multi-tile)"

    print("KERNEL_OK")
</pallas_src>

<mosaic_0001>
module attributes {stable_mosaic.version = 11 : i64} {
  func.func @_mlp_kernel(%arg0: i32, %arg1: memref<8x32xf32, #tpu.memory_space<vmem>>, %arg2: memref<32x64xf32, #tpu.memory_space<vmem>>, %arg3: memref<1x64xf32, #tpu.memory_space<vmem>>, %arg4: memref<64x32xf32, #tpu.memory_space<vmem>>, %arg5: memref<1x32xf32, #tpu.memory_space<vmem>>, %arg6: memref<1x32xf32, #tpu.memory_space<vmem>>, %arg7: memref<1x1xf32, #tpu.memory_space<vmem>>, %arg8: memref<1x8xf32, #tpu.memory_space<vmem>>) attributes {dimension_semantics = [#tpu.dimension_semantics<parallel>], iteration_bounds = array<i64: 1>, scalar_prefetch = 0 : i64, scratch_operands = 0 : i64, tpu.core_type = #tpu.core_type<tc>, window_params = [{transform_indices = @transform_0, window_bounds = array<i64: 8, 32>}, {pipeline_mode = #tpu.pipeline_mode<synchronous>, transform_indices = @transform_1, window_bounds = array<i64: 32, 64>}, {pipeline_mode = #tpu.pipeline_mode<synchronous>, transform_indices = @transform_2, window_bounds = array<i64: 1, 64>}, {pipeline_mode = #tpu.pipeline_mode<synchronous>, transform_indices = @transform_3, window_bounds = array<i64: 64, 32>}, {pipeline_mode = #tpu.pipeline_mode<synchronous>, transform_indices = @transform_4, window_bounds = array<i64: 1, 32>}, {pipeline_mode = #tpu.pipeline_mode<synchronous>, transform_indices = @transform_5, window_bounds = array<i64: 1, 32>}, {pipeline_mode = #tpu.pipeline_mode<synchronous>, transform_indices = @transform_6, window_bounds = array<i64: 1, 1>}, {transform_indices = @transform_7, window_bounds = array<i64: 1, 8>}]} {
    %c0 = arith.constant 0 : index
    %c0_0 = arith.constant 0 : index
    %0 = vector.load %arg1[%c0, %c0_0] : memref<8x32xf32, #tpu.memory_space<vmem>>, vector<8x32xf32>
    %c0_1 = arith.constant 0 : index
    %c0_2 = arith.constant 0 : index
    %1 = vector.load %arg2[%c0_1, %c0_2] : memref<32x64xf32, #tpu.memory_space<vmem>>, vector<32x64xf32>
    %cst = arith.constant dense<0.000000e+00> : vector<8x64xf32>
    %2 = tpu.matmul %0, %1, %cst {dimension_numbers = #tpu.dot_dimension_numbers<[1], [0], [0], [1], [0, 0, 1, 1], [], []>} : vector<8x32xf32>, vector<32x64xf32>, vector<8x64xf32> -> vector<8x64xf32>
    %c0_3 = arith.constant 0 : index
    %c0_4 = arith.constant 0 : index
    %3 = vector.load %arg3[%c0_3, %c0_4] : memref<1x64xf32, #tpu.memory_space<vmem>>, vector<1x64xf32>
    %4 = vector.broadcast %3 : vector<1x64xf32> to vector<8x64xf32>
    %5 = arith.addf %2, %4 : vector<8x64xf32>
    %cst_5 = arith.constant 0.000000e+00 : f32
    %6 = vector.broadcast %cst_5 : f32 to vector<8x64xf32>
    %7 = arith.maximumf %5, %6 : vector<8x64xf32>
    %c0_6 = arith.constant 0 : index
    %c0_7 = arith.constant 0 : index
    %8 = vector.load %arg4[%c0_6, %c0_7] : memref<64x32xf32, #tpu.memory_space<vmem>>, vector<64x32xf32>
    %cst_8 = arith.constant dense<0.000000e+00> : vector<8x32xf32>
    %9 = tpu.matmul %7, %8, %cst_8 {dimension_numbers = #tpu.dot_dimension_numbers<[1], [0], [0], [1], [0, 0, 1, 1], [], []>} : vector<8x64xf32>, vector<64x32xf32>, vector<8x32xf32> -> vector<8x32xf32>
    %c0_9 = arith.constant 0 : index
    %c0_10 = arith.constant 0 : index
    %10 = vector.load %arg5[%c0_9, %c0_10] : memref<1x32xf32, #tpu.memory_space<vmem>>, vector<1x32xf32>
    %11 = vector.broadcast %10 : vector<1x32xf32> to vector<8x32xf32>
    %12 = arith.addf %9, %11 : vector<8x32xf32>
    %cst_11 = arith.constant 0.000000e+00 : f32
    %13 = vector.broadcast %cst_11 : f32 to vector<8x32xf32>
    %14 = arith.maximumf %12, %13 : vector<8x32xf32>
    %c0_12 = arith.constant 0 : index
    %c0_13 = arith.constant 0 : index
    %15 = vector.load %arg6[%c0_12, %c0_13] : memref<1x32xf32, #tpu.memory_space<vmem>>, vector<1x32xf32>
    %cst_14 = arith.constant dense<0.000000e+00> : vector<1x8xf32>
    %16 = tpu.matmul %15, %14, %cst_14 {dimension_numbers = #tpu.dot_dimension_numbers<[1], [1], [0], [0], [0, 0, 1, 0], [], []>} : vector<1x32xf32>, vector<8x32xf32>, vector<1x8xf32> -> vector<1x8xf32>
    %c0_15 = arith.constant 0 : index
    %c0_16 = arith.constant 0 : index
    %17 = vector.load %arg7[%c0_15, %c0_16] : memref<1x1xf32, #tpu.memory_space<vmem>>, vector<1x1xf32>
    %18 = vector.broadcast %17 : vector<1x1xf32> to vector<1x8xf32>
    %19 = arith.addf %16, %18 : vector<1x8xf32>
    %20 = arith.negf %19 : vector<1x8xf32>
    %21 = math.exp %20 : vector<1x8xf32>
    %cst_17 = arith.constant 1.000000e+00 : f32
    %22 = vector.broadcast %cst_17 : f32 to vector<1x8xf32>
    %23 = arith.addf %22, %21 : vector<1x8xf32>
    %24 = arith.divf %22, %23 : vector<1x8xf32>
    %c0_18 = arith.constant 0 : index
    %c0_19 = arith.constant 0 : index
    %25 = vector.load %arg8[%c0_18, %c0_19] : memref<1x8xf32, #tpu.memory_space<vmem>>, vector<1x8xf32>
    tpu.vector_store %arg8[%c0_18, %c0_19], %24 {strides = array<i32>} : memref<1x8xf32, #tpu.memory_space<vmem>>, vector<1x8xf32>,
    return
  }
  func.func @transform_0(%arg0: i32) -> (i32, i32) {
    %c0_i32 = arith.constant 0 : i32
    %c0_i32_0 = arith.constant 0 : i32
    return %arg0, %c0_i32 : i32, i32
  }
  func.func @transform_1(%arg0: i32) -> (i32, i32) {
    %c0_i32 = arith.constant 0 : i32
    %c0_i32_0 = arith.constant 0 : i32
    %c0_i32_1 = arith.constant 0 : i32
    return %c0_i32, %c0_i32_0 : i32, i32
  }
  func.func @transform_2(%arg0: i32) -> (i32, i32) {
    %c0_i32 = arith.constant 0 : i32
    %c0_i32_0 = arith.constant 0 : i32
    %c0_i32_1 = arith.constant 0 : i32
    return %c0_i32, %c0_i32_0 : i32, i32
  }
  func.func @transform_3(%arg0: i32) -> (i32, i32) {
    %c0_i32 = arith.constant 0 : i32
    %c0_i32_0 = arith.constant 0 : i32
    %c0_i32_1 = arith.constant 0 : i32
    return %c0_i32, %c0_i32_0 : i32, i32
  }
  func.func @transform_4(%arg0: i32) -> (i32, i32) {
    %c0_i32 = arith.constant 0 : i32
    %c0_i32_0 = arith.constant 0 : i32
    %c0_i32_1 = arith.constant 0 : i32
    return %c0_i32, %c0_i32_0 : i32, i32
  }
  func.func @transform_5(%arg0: i32) -> (i32, i32) {
    %c0_i32 = arith.constant 0 : i32
    %c0_i32_0 = arith.constant 0 : i32
    %c0_i32_1 = arith.constant 0 : i32
    return %c0_i32, %c0_i32_0 : i32, i32
  }
  func.func @transform_6(%arg0: i32) -> (i32, i32) {
    %c0_i32 = arith.constant 0 : i32
    %c0_i32_0 = arith.constant 0 : i32
    %c0_i32_1 = arith.constant 0 : i32
    return %c0_i32, %c0_i32_0 : i32, i32
  }
  func.func @transform_7(%arg0: i32) -> (i32, i32) {
    %c0_i32 = arith.constant 0 : i32
    %c0_i32_0 = arith.constant 0 : i32
    return %c0_i32, %arg0 : i32, i32
  }
}

</mosaic_0001>

<bundles_post_ra>
// kernel: tpu_custom_call.1
= control target key start
LH: loop header
LB: loop body
LE: loop exit
PB: predicated region body
PF: predicated region fallthrough
CT: control target
= control target key end

     0   :  { %s310_s0 = inlined_call_operand.vmem [shape: f32[2,32], index: 0, kind: input, shape index: {}]   ;;  %s311_s1 = inlined_call_operand.vmem [shape: f32[32,64], index: 1, kind: input, shape index: {}]   ;;  %s312_s2 = inlined_call_operand.vmem [shape: f32[1,64], index: 2, kind: input, shape index: {}]   ;;  %s313_s3 = inlined_call_operand.vmem [shape: f32[64,32], index: 3, kind: input, shape index: {}]   ;;  %s314_s4 = inlined_call_operand.vmem [shape: f32[1,32], index: 4, kind: input, shape index: {}]   ;;  %s315_s5 = inlined_call_operand.vmem [shape: f32[1,32], index: 5, kind: input, shape index: {}]   ;;  %s316_s6 = inlined_call_operand.<no memory space> [shape: f32[1,1], index: 6, kind: input, shape index: {}]   ;;  %s317_s7 = inlined_call_operand.hbm [shape: f32[1,8], index: 7, kind: output, shape index: {}]  }
   0x1   :  { %v12_v0 = vstv %s316_s6 }
   0x2   :  { %13 = vst [vmem:[#allocation2] sm:$0x1] %v12_v0 }
   0x3   :  { %v33_v1 = vld [vmem:[%s311_s1 + $0x18] sm:$0xff]  ;;  %v32_v2 = vld [vmem:[%s311_s1 + $0x10] sm:$0xff]  ;;  %v31_v4 = vld [vmem:[%s311_s1 + $0x8] sm:$0xff] }
   0x4   :  { %54 = vmatpush.msra.mxu0 %v33_v1  ;;  %v70_v3 = vld [vmem:[%s313_s3 + $0x38] sm:$0xff]  ;;  %v69_v5 = vld [vmem:[%s313_s3 + $0x30] sm:$0xff]  ;;  %v68_v6 = vld [vmem:[%s313_s3 + $0x28] sm:$0xff] }
   0x5   :  { %87 = vmatpush.msra.mxu1 %v70_v3  ;;  %v30_v7 = vld [vmem:[%s311_s1] sm:$0xff] }
   0x6   :  { %55 = vmatpush.msra.mxu0 %v32_v2 }
   0x7   :  { %88 = vmatpush.msra.mxu1 %v69_v5 }
   0x8   :  { %14 = vsyncpa [#allocation4], 0  ;;  %56 = vmatpush.msra.mxu0 %v31_v4  ;;  %v29_v8 = vld [vmem:[%s310_s0] sm:$0xff]  ;;  %vm38_vm0 = vcmask 261120   ;;  %v66_v10 = vld [vmem:[%s313_s3 + $0x18] sm:$0xff]  ;;  %vm75_vm1 = vcmask 523264  }
   0x9   :  { %v67_v9 = vld [vmem:[%s313_s3 + $0x20] sm:$0xff]  ;;  %89 = vmatpush.msra.mxu1 %v68_v6  ;;  %v65_v11 = vld [vmem:[%s313_s3 + $0x10] sm:$0xff]  ;;  %v64_v12 = vld [vmem:[%s313_s3 + $0x8] sm:$0xff]  ;;  %v211_v19 = vmov 0   ;;  %s162_s9 = sshll.u32 %s317_s7, 4  ;;  %vm153_vm5 = vcmask 57344   ;;  %s163_s9 = int_to_ptr.hbm [resolvable:$true] %s162_s9 }
   0xa   :  { %57 = vmatpush.msra.mxu0 %v30_v7  ;;  %v63_v13 = vld [vmem:[%s313_s3] sm:$0xff]  ;;  %178 = vset.pattern.permute.xlu0 %v211_v19 }
   0xb   :  { %171 = vmatmul.msk.f32.vlgmr.msra.gmra.mxu0 %vm38_vm0, %v29_v8  ;;  %90 = vmatpush.msra.mxu1 %v67_v9  ;;  %v179_v14 = vld [vmem:[%s312_s2] ss:$0 sm:$0xff] }
   0xc   :  { %v101_v18 = vld [vmem:[#allocation2] sm:$0x1] }
   0xd   :  { %91 = vmatpush.msra.mxu1 %v66_v10  ;;  %104 = vperm.xlu0 %178, %v101_v18   ;;  %v180_v20 = vld [vmem:[%s314_s4] ss:$0 sm:$0xff]  ;;  %s212_s4 = smov [#allocation3]  }
   0xe   :  { %v100_v24 = vld [vmem:[%s315_s5] sm:$0x1]  ;;  %s160_s5 = sshll.u32 %s212_s4, 4  ;;  %s161_s5 = int_to_ptr.vmem [resolvable:$true] %s160_s5 }
   0xf   :  { %92 = vmatpush.msra.mxu1 %v65_v11 }
  0x11   :  { %93 = vmatpush.msra.mxu1 %v64_v12 }
  0x13   :  { %94 = vmatpush.msra.mxu1 %v63_v13 }
  0x7f   :  { %v105_v25 = vpop.permute.xlu0 %104 }
  0x80   :  { %v107_v26 = vperm.slane %v105_v25, 0 }
  0x88   :  { %v59_v15 = vpop.f32.mrf.mxu0 }
  0x89   :  { %v60_v16 = vadd.f32 %v179_v14, %v59_v15 }
  0x8b   :  { %v62_v17 = vmax.f32 %v60_v16, 0.0 }
  0x8d   :  { %172 = vmatmul.msk.f32.vlgmr.msra.gmra.mxu1 %vm75_vm1, %v62_v17 }
 0x10a   :  { %v96_v21 = vpop.f32.mrf.mxu1 }
 0x10b   :  { %v97_v22 = vadd.f32 %v180_v20, %v96_v21 }
 0x10d   :  { %v99_v23 = vmax.f32 %v97_v22, 0.0 }
 0x10f   :  { %173 = vmatpush.xpose.msk.msra.mxu2 %vm38_vm0, %v99_v23 }
 0x112   :  { %174 = vmatmul.msk.f32.vlgmr.msra.gmra.mxu2 %vm38_vm0, %v100_v24 }
 0x195   :  { %v131_v27 = vpop.f32.mrf.mxu2 }
 0x196   :  { %v132_v28 = vadd.f32 %v131_v27, %v107_v26 }
 0x198   :  { %v175_v29 = vmul.f32 -1.442695, %v132_v28 }
 0x19a   :  { %181 = vpow2.f32 %v175_v29 }
 0x1a0   :  { %v182_v30 = vpop.eup %181 }
 0x1a1   :  { %v137_v31 = vadd.f32 1.0, %v182_v30 }
 0x1a3   :  { %183 = vrcp.f32 %v137_v31  ;;  %v149_v35 = vand.u32 2147483648, %v137_v31  ;;  %v147_v37 = vand.u32 2147483647, %v137_v31  ;;  %vm143_vm3 = vweird.f32 %v137_v31 }
 0x1a5   :  { %v150_v39 = vor.u32 1.1754944e-38, %v149_v35  ;;  %vm148_vm6 = vcmp.eq.f32.partialorder %v147_v37, 8.507059e+37 }
 0x1a9   :  { %v184_v32 = vpop.eup %183 }
 0x1aa   :  { %v139_v33 = vmul.f32 %v184_v32, %v137_v31  ;;  %vm144_vm2 = vweird.f32 %v184_v32 }
 0x1ab   :  { %vm145_vm4 = vmor %vm143_vm3, %vm144_vm2 }
 0x1ac   :  { %v140_v34 = vsub.f32 1.0, %v139_v33 }
 0x1ae   :  { %v141_v36 = vmul.f32 %v184_v32, %v140_v34 }
 0x1b0   :  { %v142_v38 = vadd.f32 %v184_v32, %v141_v36 }
 0x1b2   :  { %v146_v40 = vsel %vm145_vm4, %v184_v32, %v142_v38 }
 0x1b3   :  { %v151_v41 = vsel %vm148_vm6, %v150_v39, %v146_v40 }
 0x1b4   :  { %154 = vst.msk [vmem:[#allocation3] sm:$0x1] %vm153_vm5, %v151_v41 }
 0x1b5   :  { %165 = dma.vmem_to_hbm [thread:$0]  %s161_s5, 16, %s163_s9, [#allocation4]  }
 0x1b6   :  { %209 = dma.done.wait [#allocation4], 16  }
 0x1b7   :  { %210 = vsyncadd [#allocation4], 4294967280 }
 0x1b8   :  { %170 = vsyncpa [#allocation4], 1 }

</bundles_post_ra>
